<compile_context>
chip_gen: v7x
topology: tpu7x:2x2x1
jax: 0.10.0
libtpu: 0.0.40
codegen_flags: <defaults>
</compile_context>

<pallas_src>
import jax
import jax.numpy as jnp
from jax.experimental import pallas as pl
from jax.experimental.pallas import tpu as pltpu


def _attention_kernel(emb_ref, w_ref, out_ref):
    g, n, d = emb_ref.shape                        # graphs-per-block, nodes, dim
    emb = emb_ref[...]                             # [G, N, D]  float32
    w = w_ref[...]                                 # [D, D]

    # (1) embedding @ W for all G*N node rows at once -> one MXU matmul with
    #     M = G*N instead of G tiny M=N matmuls.  Collapsing leading dims keeps
    #     the lane (last) dim untouched, so the reshape is layout-free.
    h = jnp.dot(emb.reshape(g * n, d), w,
                preferred_element_type=jnp.float32)            # [G*N, D]

    # (2) per-graph global context (mean over nodes) + tanh (EUP).
    ctx = jnp.mean(h.reshape(g, n, d), axis=1, keepdims=True)  # [G, 1, D]
    t = jnp.tanh(ctx)                                          # [G, 1, D]

    # (3) per-node attention score: sigmoid(<emb_i, tanh(ctx)>).
    #     Broadcast-multiply (VPU) + lane reduce (XLU); exp on the EUP.
    logits = jnp.sum(emb * t, axis=-1, keepdims=True)          # [G, N, 1]
    scores = 1.0 / (1.0 + jnp.exp(-logits))                    # [G, N, 1]

    # (4) representation = emb^T @ scores per graph, written lane-dense [G, D].
    rep = jnp.sum(emb * scores, axis=1)                        # [G, D]
    out_ref[...] = rep.astype(out_ref.dtype)


def _choose_graphs_per_block(b, n, target_rows=128):
    """Pick graphs-per-block so each matmul sees ~target_rows node rows while the
    output block's second-to-last dim stays layout-legal (== b or multiple of 8)."""
    if b * n <= target_rows:
        return b
    best = b
    for g in range(1, b + 1):
        if b % g != 0:
            continue
        if g != b and g % 8 != 0:
            continue
        if g * n <= target_rows:
            best = g                   # ascending loop -> keep the largest valid g
    return best


def attention_forward(embedding, weight):
    """embedding: [B, N, D] (or [N, D] for a single graph), weight: [D, D].

    Returns [B, D] (batched) or [D, 1] (single graph, matching torch)."""
    squeeze = embedding.ndim == 2
    if squeeze:
        embedding = embedding[None]
    b, n, d = embedding.shape
    gb = _choose_graphs_per_block(b, n)
    grid = (b // gb,)

    out = pl.pallas_call(
        _attention_kernel,
        out_shape=jax.ShapeDtypeStruct((b, d), jnp.float32),
        grid=grid,
        in_specs=[
            pl.BlockSpec((gb, n, d), lambda i: (i, 0, 0)),   # block of graphs
            pl.BlockSpec((d, d), lambda i: (0, 0)),          # shared weight, stays in VMEM
        ],
        out_specs=pl.BlockSpec((gb, d), lambda i: (i, 0)),   # lane-dense slab
        compiler_params=pltpu.CompilerParams(
            dimension_semantics=("parallel",)),
    )(embedding, weight)

    if squeeze:
        return out[0][:, None]        # torch returns [dim, 1] for one graph
    return out


def _reference(embedding, weight):
    """Pure-JAX mirror of AttentionModule.forward, vmapped over the batch."""
    def one(e):
        global_context = jnp.mean(e @ weight, axis=0)
        transformed_global = jnp.tanh(global_context)
        sigmoid_scores = jax.nn.sigmoid(e @ transformed_global[:, None])  # [N, 1]
        representation = e.T @ sigmoid_scores                             # [D, 1]
        return representation[:, 0]
    return jax.vmap(one)(embedding)


if __name__ == "__main__":
    key = jax.random.PRNGKey(0)
    k_emb, k_w = jax.random.split(key)

    B = 16      # graphs per call (batched for MXU utilization)
    N = 16      # nodes per graph
    D = 32      # embedding dim (filters_3 in SimGNN)

    embedding = jax.random.normal(k_emb, (B, N, D), dtype=jnp.float32)
    bound = (6.0 / (D + D)) ** 0.5   # xavier_uniform_ for a [D, D] weight
    weight = jax.random.uniform(k_w, (D, D), minval=-bound, maxval=bound,
                                dtype=jnp.float32)

    out = attention_forward(embedding, weight)
    out = jax.block_until_ready(out)

    ref = _reference(embedding, weight)
    assert out.shape == (B, D), out.shape
    assert jnp.allclose(out, ref, atol=1e-4, rtol=1e-4), float(
        jnp.max(jnp.abs(out - ref)))

    # Also check the single-graph path matches the torch [dim, 1] contract.
    single = attention_forward(embedding[0], weight)
    single = jax.block_until_ready(single)
    assert single.shape == (D, 1), single.shape
    assert jnp.allclose(single[:, 0], ref[0], atol=1e-4, rtol=1e-4)

    print("KERNEL_OK")
</pallas_src>

<mosaic_0001>
module attributes {stable_mosaic.version = 11 : i64} {
  func.func @_attention_kernel(%arg0: i32, %arg1: memref<8x16x32xf32, #tpu.memory_space<vmem>>, %arg2: memref<32x32xf32, #tpu.memory_space<vmem>>, %arg3: memref<8x32xf32, #tpu.memory_space<vmem>>) attributes {dimension_semantics = [#tpu.dimension_semantics<parallel>], iteration_bounds = array<i64: 2>, scalar_prefetch = 0 : i64, scratch_operands = 0 : i64, tpu.core_type = #tpu.core_type<tc>, window_params = [{transform_indices = @transform_0, window_bounds = array<i64: 8, 16, 32>}, {pipeline_mode = #tpu.pipeline_mode<synchronous>, transform_indices = @transform_1, window_bounds = array<i64: 32, 32>}, {transform_indices = @transform_2, window_bounds = array<i64: 8, 32>}]} {
    %c0 = arith.constant 0 : index
    %c0_0 = arith.constant 0 : index
    %c0_1 = arith.constant 0 : index
    %0 = vector.load %arg1[%c0, %c0_0, %c0_1] : memref<8x16x32xf32, #tpu.memory_space<vmem>>, vector<8x16x32xf32>
    %c0_2 = arith.constant 0 : index
    %c0_3 = arith.constant 0 : index
    %1 = vector.load %arg2[%c0_2, %c0_3] : memref<32x32xf32, #tpu.memory_space<vmem>>, vector<32x32xf32>
    %2 = vector.shape_cast %0 : vector<8x16x32xf32> to vector<128x32xf32>
    %cst = arith.constant dense<0.000000e+00> : vector<128x32xf32>
    %3 = tpu.matmul %2, %1, %cst {dimension_numbers = #tpu.dot_dimension_numbers<[1], [0], [0], [1], [0, 0, 1, 1], [], []>} : vector<128x32xf32>, vector<32x32xf32>, vector<128x32xf32> -> vector<128x32xf32>
    %4 = vector.shape_cast %3 : vector<128x32xf32> to vector<8x16x32xf32>
    %cst_4 = arith.constant dense<0.000000e+00> : vector<8x32xf32>
    %5 = vector.multi_reduction <add>, %4, %cst_4 [1] : vector<8x16x32xf32> to vector<8x32xf32>
    %6 = vector.shape_cast %5 : vector<8x32xf32> to vector<8x1x32xf32>
    %cst_5 = arith.constant 1.600000e+01 : f32
    %7 = vector.broadcast %cst_5 : f32 to vector<8x1x32xf32>
    %8 = arith.divf %6, %7 : vector<8x1x32xf32>
    %9 = math.tanh %8 : vector<8x1x32xf32>
    %10 = vector.broadcast %9 : vector<8x1x32xf32> to vector<8x16x32xf32>
    %11 = arith.mulf %0, %10 : vector<8x16x32xf32>
    %cst_6 = arith.constant dense<0.000000e+00> : vector<8x16xf32>
    %12 = vector.multi_reduction <add>, %11, %cst_6 [2] : vector<8x16x32xf32> to vector<8x16xf32>
    %13 = vector.shape_cast %12 : vector<8x16xf32> to vector<8x16x1xf32>
    %cst_7 = arith.constant 0.000000e+00 : f32
    %14 = vector.broadcast %cst_7 : f32 to vector<8x16x1xf32>
    %15 = arith.subf %14, %13 : vector<8x16x1xf32>
    %16 = math.exp %15 : vector<8x16x1xf32>
    %cst_8 = arith.constant 1.000000e+00 : f32
    %17 = vector.broadcast %cst_8 : f32 to vector<8x16x1xf32>
    %18 = arith.addf %17, %16 : vector<8x16x1xf32>
    %cst_9 = arith.constant 1.000000e+00 : f32
    %19 = vector.broadcast %cst_9 : f32 to vector<8x16x1xf32>
    %20 = arith.divf %19, %18 : vector<8x16x1xf32>
    %21 = vector.broadcast %20 : vector<8x16x1xf32> to vector<8x16x32xf32>
    %22 = arith.mulf %0, %21 : vector<8x16x32xf32>
    %cst_10 = arith.constant dense<0.000000e+00> : vector<8x32xf32>
    %23 = vector.multi_reduction <add>, %22, %cst_10 [1] : vector<8x16x32xf32> to vector<8x32xf32>
    %c0_11 = arith.constant 0 : index
    %c0_12 = arith.constant 0 : index
    %24 = vector.load %arg3[%c0_11, %c0_12] : memref<8x32xf32, #tpu.memory_space<vmem>>, vector<8x32xf32>
    tpu.vector_store %arg3[%c0_11, %c0_12], %23 {strides = array<i32>} : memref<8x32xf32, #tpu.memory_space<vmem>>, vector<8x32xf32>,
    return
  }
  func.func @transform_0(%arg0: i32) -> (i32, i32, i32) {
    %c0_i32 = arith.constant 0 : i32
    %c0_i32_0 = arith.constant 0 : i32
    %c0_i32_1 = arith.constant 0 : i32
    return %arg0, %c0_i32, %c0_i32_0 : i32, i32, i32
  }
  func.func @transform_1(%arg0: i32) -> (i32, i32) {
    %c0_i32 = arith.constant 0 : i32
    %c0_i32_0 = arith.constant 0 : i32
    %c0_i32_1 = arith.constant 0 : i32
    return %c0_i32, %c0_i32_0 : i32, i32
  }
  func.func @transform_2(%arg0: i32) -> (i32, i32) {
    %c0_i32 = arith.constant 0 : i32
    %c0_i32_0 = arith.constant 0 : i32
    return %arg0, %c0_i32 : i32, i32
  }
}

</mosaic_0001>

<bundles_post_ra>
// kernel: tpu_custom_call.1
= control target key start
LH: loop header
LB: loop body
LE: loop exit
PB: predicated region body
PF: predicated region fallthrough
CT: control target
= control target key end

     0   :  { %7 = vsyncpa [#allocation3], 0  ;;  %s1604_s0 = inlined_call_operand.hbm [shape: f32[16,16,32], index: 0, kind: input, shape index: {}]   ;;  %s1605_s1 = inlined_call_operand.hbm [shape: f32[32,32], index: 1, kind: input, shape index: {}]   ;;  %s1606_s2 = inlined_call_operand.hbm [shape: f32[16,32], index: 2, kind: output, shape index: {}]  }
   0x1   :  { %9 = vsyncpa [#allocation3 + $0x1], 0 }
   0x2   :  { %10 = vsyncpa [#allocation6], 0 }
   0x3   :  { %11 = vsyncpa [#allocation4], 0 }
   0x4   :  { %13 = vsyncpa [#allocation4 + $0x1], 0  ;;  %s1235_s9 = smov 0   ;;  %s1237_s10 = smov 0  }
   0x5   :  { %s1239_s11 = smov 0   ;;  %s1241_s12 = smov 0  }
   0x6 LB: > { %s1256_s13 = sadd.s32 4294967295, %s1213_s12   ;;  %s848_s14 = sadd.s32 4294967294, %s1213_s12   ;;  %s1213_s12 = sphi %s1241_s12, %s1626_s12   ;;  %s1209_s11 = sphi %s1239_s11, %s1625_s11   ;;  %s1205_s10 = sphi %s1237_s10, %s1624_s10   ;;  %s1201_s9 = sphi %s1235_s9, %s1623_s9  }
   0x7   : > { %p39_p0 = scmp.ne.s32.totalorder %s1205_s10, %s1201_s9  ;;  %p1607_p1 = scmp.eq.s32.totalorder %s1256_s13, 0 }
   0x8   : > { %p90_p3 = scmp.eq.s32.totalorder %s848_s14, 1  ;;  %p849_p5 = scmp.ge.s32.totalorder %s1213_s12, 1 }
   0x9   : > { %p1265_p4 = por %p1607_p1, %p39_p0  ;;  %p97_p7 = scmp.lt.s32.totalorder %s1213_s12, 3 }
   0xa   : > { %p1270_p6 = por %p90_p3, %p39_p0  ;;  %s1215_s18 = smov [#allocation5]  }
   0xb   : > { %s1610_s15 = scalar_select %p1265_p4, 1, 0 }
   0xc   : > { %s1611_s16 = scalar_select %p1270_p6, 1, 0 }
   0xd   : > { %p1275_p8 = pnand %p849_p5, %p97_p7  ;;  %s109_s19 = sshll.u32 %s1215_s18, 4  ;;  %s1279_s19 = int_to_ptr.vmem [resolvable:$true] %s109_s19 }
   0xe   : > { %s1291_s21 = sadd.s32 1, %s1213_s12   ;;  %s26_s22 = sadd.s32 1, %s1209_s11 }
   0xf   : > { %s1612_s17 = scalar_select %p1275_p8, 1, 0 }
  0x10   : > { %p954_p9 = pneg %p1275_p8  ;;  %s23_s23 = ssub.s32 %s1213_s12, %s1291_s21 }
  0x11   : > { %s1085_s26 = scalar_lea.hbm %s1605_s1, 512 }
  0x12   : > { %p1286_p11 = pnand %p954_p9, %p1607_p1  ;;  %p1086_p12 = scmp.ne.s32.totalorder %s1605_s1, %s1085_s26 }
  0x13   : > { %p1092_p5 = scmp.lt.u32.totalorder %s1085_s26, %s1605_s1 }
  0x14   : > { %p1087_p13 = pneg %p1286_p11 }
  0x16   : > { %p1088_p0 = pnand %p1087_p13, %p1086_p12 }
  0x18   : > { %p1089_p3 = pneg %p1088_p0 }
  0x1a   : > { %p1094_p7 = pnand %p1092_p5, %p1089_p3 }
  0x1c   : > { %1097 = shalt.err (!%p1094_p7)
}
  0x1d   : > { %s1098_s3 = scalar_lea.vmem %s1279_s19, 512  ;;  %p1106_p2 = scmp.lt.s32.totalorder %s1279_s19, %s1279_s19 }
  0x1e   : > { %p1099_p9 = scmp.ne.s32.totalorder %s1279_s19, %s1098_s3  ;;  %p1107_p6 = scmp.lt.s32.totalorder %s1098_s3, %s1098_s3 }
  0x20   : > { %p1101_p10 = pnand %p1099_p9, %p1087_p13  ;;  %p1108_p4 = por %p1107_p6, %p1106_p2 }
  0x22   : > { %p1102_p1 = pneg %p1101_p10 }
  0x24   : > { %p1109_p8 = pnand %p1108_p4, %p1102_p1 }
  0x26   : > { %1112 = shalt.err (!%p1109_p8)
}
  0x27   : > { %s1216_s4 = smov 128   ;;  %s1217_s5 = smov 8  }
  0x28   : > { %957 = dma.hbm_to_vmem [thread:$0]  (!%p1286_p11), %s1605_s1, 512, %s1279_s19, [#allocation6], %s1216_s4, %s1216_s4, %s1217_s5  }
  0x29   : > { %p24_p1 = scmp.eq.s32.totalorder %s23_s23, 0  ;;  %p33_p2 = scmp.ne.s32.totalorder %s1209_s11, %s1205_s10 }
  0x2a   : > { %p34_p4 = scmp.eq.s32.totalorder %s1213_s12, 0  ;;  %p967_p6 = scmp.lt.s32.totalorder %s1213_s12, 2 }
  0x2b   : > { %s1325_s8 = scalar_select %p24_p1, %s1209_s11, %s26_s22  }
  0x2c   : > { %p35_p8 = por %p34_p4, %p33_p2  ;;  %p1614_p10 = scmp.eq.s32.totalorder %s1256_s13, 1 }
  0x2d   : > { %s123_s18 = sand.u32 1, %s1209_s11   ;;  %s881_s20 = sshll.u32 %s1213_s12, 11 }
  0x2e   : > { %p1329_p12 = por %p1614_p10, %p33_p2  ;;  %s852_s24 = sshll.u32 %s123_s18, 7 }
  0x2f   : > { %s1338_s27 = scalar_lea.hbm %s1604_s0, %s881_s20  ;;  %s127_s19 = scalar_lea.vmem [#allocation2], %s852_s24 }
  0x30   : > { %s135_s22 = sshll.u32 %s127_s19, 4  ;;  %p1340_p11 = pnand %p967_p6, %p35_p8  ;;  %s1344_s22 = int_to_ptr.vmem [resolvable:$true] %s135_s22 }
  0x31   : > { %s1346_s28 = scalar_lea.sflag [#allocation3], %s123_s18  ;;  %s1113_s29 = scalar_lea.hbm %s1338_s27, 2048 }
  0x32   : > { %p1114_p13 = scmp.ne.s32.totalorder %s1338_s27, %s1113_s29  ;;  %p1115_p0 = pneg %p1340_p11 }
  0x33   : > { %s1118_s6 = scalar_lea.hbm %s1604_s0, 4096  ;;  %p1119_p7 = scmp.lt.u32.totalorder %s1338_s27, %s1604_s0 }
  0x34   : > { %p1116_p3 = pnand %p1115_p0, %p1114_p13  ;;  %p1120_p9 = scmp.lt.u32.totalorder %s1118_s6, %s1113_s29 }
  0x35   : > { %p1122_p2 = scmp.lt.u32.totalorder %s1113_s29, %s1338_s27 }
  0x36   : > { %p1117_p5 = pneg %p1116_p3  ;;  %p1121_p1 = por %p1120_p9, %p1119_p7 }
  0x38   : > { %p1123_p4 = por %p1122_p2, %p1121_p1 }
  0x3a   : > { %p1124_p6 = pnand %p1123_p4, %p1117_p5 }
  0x3c   : > { %1127 = shalt.err (!%p1124_p6)
}
  0x3d   : > { %s1128_s18 = scalar_lea.vmem %s1344_s22, 2048  ;;  %s1218_s24 = smov [#allocation2]  }
  0x3e   : > { %p1129_p8 = scmp.ne.s32.totalorder %s1344_s22, %s1128_s18  ;;  %s1133_s25 = sshll.u32 %s1218_s24, 4  ;;  %s1134_s25 = int_to_ptr.vmem [resolvable:$false] %s1133_s25 }
  0x3f   : > { %s1135_s26 = scalar_lea.vmem %s1134_s25, 4096  ;;  %p1136_p3 = scmp.lt.s32.totalorder %s1344_s22, %s1134_s25 }
  0x40   : > { %p1131_p10 = pnand %p1129_p8, %p1115_p0  ;;  %p1137_p7 = scmp.lt.s32.totalorder %s1135_s26, %s1128_s18 }
  0x42   : > { %p1132_p13 = pneg %p1131_p10  ;;  %p1138_p9 = por %p1137_p7, %p1136_p3 }
  0x44   : > { %p1139_p1 = pnand %p1138_p9, %p1132_p13 }
  0x46   : > { %1142 = shalt.err (!%p1139_p1)
}
  0x47   : > { %961 = dma.hbm_to_vmem [thread:$0]  (!%p1340_p11), %s1338_s27, 2048, %s1344_s22, %s1346_s28, %s1216_s4, %s1216_s4, %s1217_s5  }
  0x48   : > { %p1617_p0 = scmp.ne.s32.totalorder %s1612_s17, 0 }
  0x49   : > { %s1380_s19 = sand.u32 (!%p1617_p0), 1, %s1205_s10   ;;  %p1618_p5 = scmp.ne.s32.totalorder (!%p1617_p0), %s1610_s15, 0 }
  0x4a   : > { %147 = sbr.rel (%p1617_p0) target bundleno = 573 (0x23d), region = 28  ;;  %s857_s29 = sshll.u32 (!%p1617_p0), %s1380_s19, 7 }
  0x4b   : > { %s150_s30 = scalar_lea.sflag (!%p1617_p0), [#allocation3], %s1380_s19  ;;  %s1384_s3 = scalar_lea.vmem (!%p1617_p0), [#allocation2], %s857_s29 }
  0x51   : > { %1188 = dma.done.wait (%p1618_p5), %s150_s30, 2048  }
  0x52   : > { %1190 = vsyncadd (%p1618_p5), %s150_s30, 4294965248  ;;  %p1619_p11 = scmp.eq.s32.totalorder %s1256_s13, 0 }
  0x54   : > { %1192 = dma.done.wait (%p1619_p11), [#allocation6], 512   ;;  %p1620_p2 = pmov %p1619_p11 }
  0x55   : > { %vm199_vm0 = vcmask 261120   ;;  %v195_v0 = vld [vmem:[#allocation5] sm:$0xff]  ;;  %v196_v1 = vld [vmem:[#allocation5 + $0x8] sm:$0xff]  ;;  %v197_v2 = vld [vmem:[#allocation5 + $0x10] sm:$0xff]  ;;  %s859_s15 = sshll.u32 %s1380_s19, 3  ;;  %vm738_vm1 = vcmask 1041409  }
  0x56   : > { %1194 = vsyncadd (%p1620_p2), [#allocation6], 4294966784  ;;  %v934_v3 = vpack.c.bf16 %v196_v1, %v195_v0  ;;  %v198_v4 = vld [vmem:[#allocation5 + $0x18] sm:$0xff]  ;;  %v1395_v5 = vld [vmem:[%s1384_s3] sm:$0xff]  ;;  %vm740_vm2 = vcmask 1042434   ;;  %vm742_vm3 = vcmask 1043459  }
  0x57   : > { %v1398_v6 = vld [vmem:[%s1384_s3 + $0x40] sm:$0xff]  ;;  %v938_v7 = vpack.c.bf16 %v198_v4, %v197_v2  ;;  %910 = vmatprep.mubr.msk.f32.mxu0 %vm199_vm0, %v1395_v5  ;;  %v1405_v8 = vld [vmem:[%s1384_s3 + $0x8] sm:$0xff]  ;;  %v1411_v10 = vld [vmem:[%s1384_s3 + $0x10] sm:$0xff]  ;;  %vm744_vm4 = vcmask 1044484   ;;  %vm746_vm5 = vcmask 1045509   ;;  %vm748_vm6 = vcmask 1046534  }
  0x58   : > { %922 = vmatprep.mubr.msk.f32.mxu1 %vm199_vm0, %v1398_v6  ;;  %935 = vmatprep.subr.bf16.mxu0 %v934_v3  ;;  %v1408_v9 = vld [vmem:[%s1384_s3 + $0x48] sm:$0xff]  ;;  %v1414_v11 = vld [vmem:[%s1384_s3 + $0x50] sm:$0xff]  ;;  %v1423_v12 = vld [vmem:[%s1384_s3 + $0x18] sm:$0xff]  ;;  %s877_s17 = sshll.u32 %s1256_s13, 7  ;;  %s177_s4 = scalar_lea.vmem [#allocation7], %s859_s15  ;;  %vm750_vm7 = vcmask 1047559  }
  0x59   : > { %942 = vmatprep.subr.bf16.mxu1 %v934_v3  ;;  %937 = vmatpush3.bf16.msra.mxu0 %v934_v3  ;;  %v1428_v13 = vld [vmem:[%s1384_s3 + $0x58] sm:$0xff]  ;;  %v1431_v14 = vld [vmem:[%s1384_s3 + $0x20] sm:$0xff]  ;;  %v1443_v16 = vld [vmem:[%s1384_s3 + $0x28] sm:$0xff]  ;;  %s768_s5 = sshll.u32 %s177_s4, 4  ;;  %s1559_s23 = scalar_lea.hbm %s1606_s2, %s877_s17  ;;  %s1561_s5 = int_to_ptr.vmem [resolvable:$true] %s768_s5 }
  0x5a   : > { %944 = vmatpush3.bf16.msra.mxu1 %v934_v3  ;;  %939 = vmatprep.subr.bf16.mxu0 %v938_v7  ;;  %v1434_v15 = vld [vmem:[%s1384_s3 + $0x60] sm:$0xff]  ;;  %v1448_v17 = vld [vmem:[%s1384_s3 + $0x68] sm:$0xff]  ;;  %v1451_v18 = vld [vmem:[%s1384_s3 + $0x30] sm:$0xff]  ;;  %s755_s13 = scalar_lea.sflag [#allocation4], %s1380_s19  ;;  %s1143_s28 = scalar_lea.vmem %s1561_s5, 128 }
  0x5b   : > { %943 = vmatprep.subr.bf16.mxu1 %v938_v7  ;;  %v1454_v19 = vld [vmem:[%s1384_s3 + $0x70] sm:$0xff]  ;;  %v1463_v20 = vld [vmem:[%s1384_s3 + $0x38] sm:$0xff]  ;;  %p1144_p4 = scmp.ne.s32.totalorder %s1561_s5, %s1143_s28  ;;  %s1219_s6 = smov [#allocation7]  }
  0x5c   : > { %v1468_v21 = vld [vmem:[%s1384_s3 + $0x78] sm:$0xff]  ;;  %s1147_s7 = sshll.u32 %s1219_s6, 4  ;;  %s1148_s7 = int_to_ptr.vmem [resolvable:$false] %s1147_s7 }
  0x5d   : > { %941 = vmatpush3.bf16.msra.mxu0 %v938_v7  ;;  %p1145_p6 = pnand %p1144_p4, %p1329_p12  ;;  %s1149_s20 = scalar_lea.vmem %s1148_s7, 256 }
  0x5e   : > { %945 = vmatpush3.bf16.msra.mxu1 %v938_v7  ;;  %p1150_p10 = scmp.lt.s32.totalorder %s1561_s5, %s1148_s7  ;;  %p1151_p13 = scmp.lt.s32.totalorder %s1149_s20, %s1143_s28 }
  0x5f   : > { %p1146_p8 = pneg %p1145_p6 }
  0x60   : > { %911 = vmatmul.mubr.msk.f32.vlgmr.msra.gmra.mrb[0].mxu0 %vm199_vm0, %v1405_v8  ;;  %p1152_p3 = por %p1151_p13, %p1150_p10 }
  0x61   : > { %923 = vmatmul.mubr.msk.f32.vlgmr.msra.gmra.mrb[0].mxu1 %vm199_vm0, %v1408_v9  ;;  %913 = vmatprep.mubr.msk.f32.mxu0 %vm199_vm0, %v1411_v10 }
  0x62   : > { %925 = vmatprep.mubr.msk.f32.mxu1 %vm199_vm0, %v1414_v11  ;;  %p1153_p7 = pnand %p1152_p3, %p1146_p8 }
  0x64   : > { %914 = vmatmul.mubr.msk.f32.gmra.mrb[2].mxu0 %vm199_vm0, %v1423_v12 }
  0x65   : > { %926 = vmatmul.mubr.msk.f32.gmra.mrb[2].mxu1 %vm199_vm0, %v1428_v13  ;;  %916 = vmatprep.mubr.msk.f32.mxu0 %vm199_vm0, %v1431_v14 }
  0x66   : > { %928 = vmatprep.mubr.msk.f32.mxu1 %vm199_vm0, %v1434_v15 }
  0x68   : > { %917 = vmatmul.mubr.msk.f32.gmra.mrb[4].mxu0 %vm199_vm0, %v1443_v16 }
  0x69   : > { %929 = vmatmul.mubr.msk.f32.gmra.mrb[4].mxu1 %vm199_vm0, %v1448_v17  ;;  %919 = vmatprep.mubr.msk.f32.mxu0 %vm199_vm0, %v1451_v18 }
  0x6a   : > { %931 = vmatprep.mubr.msk.f32.mxu1 %vm199_vm0, %v1454_v19 }
  0x6c   : > { %920 = vmatmul.mubr.msk.f32.gmra.mrb[6].mxu0 %vm199_vm0, %v1463_v20 }
  0x6d   : > { %932 = vmatmul.mubr.msk.f32.gmra.mrb[6].mxu1 %vm199_vm0, %v1468_v21 }
 0x133   : > { %v912_v22 = vpop.f32.mrb[0].mxu0 }
 0x134   : > { %v924_v23 = vpop.f32.mrb[0].mxu1  ;;  %v394_v24 = vsel %vm199_vm0, %v912_v22, 0.0  ;;  %v314_v26 = vpop.f32.mrb[1].mxu0 }
 0x135   : > { %v430_v25 = vsel %vm199_vm0, %v924_v23, 0.0  ;;  %v354_v27 = vpop.f32.mrb[1].mxu1  ;;  %v393_v28 = vsel %vm199_vm0, %v314_v26, 0.0 }
 0x136   : > { %v429_v29 = vsel %vm199_vm0, %v354_v27, 0.0  ;;  %v395_v30 = vadd.f32 %v394_v24, %v393_v28 }
 0x137   : > { %v431_v31 = vadd.f32 %v430_v25, %v429_v29  ;;  %v915_v32 = vpop.f32.mrb[2].mxu0 }
 0x138   : > { %v927_v33 = vpop.f32.mrb[2].mxu1  ;;  %v396_v34 = vrot.slane %v395_v30, 4  ;;  %v403_v36 = vsel %vm199_vm0, %v915_v32, 0.0  ;;  %v324_v37 = vpop.f32.mrb[3].mxu0 }
 0x139   : > { %v432_v35 = vrot.slane %v431_v31, 4  ;;  %v439_v38 = vsel %vm199_vm0, %v927_v33, 0.0  ;;  %v364_v39 = vpop.f32.mrb[3].mxu1  ;;  %v402_v40 = vsel %vm199_vm0, %v324_v37, 0.0 }
 0x13a   : > { %v438_v41 = vsel %vm199_vm0, %v364_v39, 0.0  ;;  %v397_v42 = vadd.f32 %v396_v34, %v395_v30  ;;  %v404_v44 = vadd.f32 %v403_v36, %v402_v40 }
 0x13b   : > { %v433_v43 = vadd.f32 %v432_v35, %v431_v31  ;;  %v440_v45 = vadd.f32 %v439_v38, %v438_v41  ;;  %v918_v46 = vpop.f32.mrb[4].mxu0 }
 0x13c   : > { %v930_v47 = vpop.f32.mrb[4].mxu1  ;;  %v398_v48 = vrot.slane %v397_v42, 2  ;;  %v405_v50 = vrot.slane %v404_v44, 4  ;;  %v334_v52 = vpop.f32.mrb[5].mxu0  ;;  %v412_v54 = vsel %vm199_vm0, %v918_v46, 0.0 }
 0x13d   : > { %v434_v49 = vrot.slane %v433_v43, 2  ;;  %v441_v51 = vrot.slane %v440_v45, 4  ;;  %v374_v53 = vpop.f32.mrb[5].mxu1  ;;  %v411_v55 = vsel %vm199_vm0, %v334_v52, 0.0  ;;  %v448_v56 = vsel %vm199_vm0, %v930_v47, 0.0 }
 0x13e   : > { %v447_v57 = vsel %vm199_vm0, %v374_v53, 0.0  ;;  %v399_v58 = vadd.f32 %v398_v48, %v397_v42  ;;  %v406_v60 = vadd.f32 %v405_v50, %v404_v44  ;;  %v413_v62 = vadd.f32 %v412_v54, %v411_v55 }
 0x13f   : > { %v435_v59 = vadd.f32 %v434_v49, %v433_v43  ;;  %v442_v61 = vadd.f32 %v441_v51, %v440_v45  ;;  %v449_v63 = vadd.f32 %v448_v56, %v447_v57  ;;  %v921_v0 = vpop.f32.mrb[6].mxu0 }
 0x140   : > { %v933_v1 = vpop.f32.mrb[6].mxu1  ;;  %v400_v2 = vrot.slane %v399_v58, 1  ;;  %v407_v4 = vrot.slane %v406_v60, 2  ;;  %v344_v22 = vpop.f32.mrb[7].mxu0  ;;  %v414_v24 = vrot.slane %v413_v62, 4  ;;  %v421_v26 = vsel %vm199_vm0, %v921_v0, 0.0 }
 0x141   : > { %v436_v3 = vrot.slane %v435_v59, 1  ;;  %v443_v7 = vrot.slane %v442_v61, 2  ;;  %v384_v23 = vpop.f32.mrb[7].mxu1  ;;  %v450_v25 = vrot.slane %v449_v63, 4  ;;  %v420_v27 = vsel %vm199_vm0, %v344_v22, 0.0 }
 0x142   : > { %v401_v28 = vadd.f32 %v400_v2, %v399_v58  ;;  %v408_v30 = vadd.f32 %v407_v4, %v406_v60  ;;  %v415_v32 = vadd.f32 %v414_v24, %v413_v62  ;;  %v422_v34 = vadd.f32 %v421_v26, %v420_v27 }
 0x143   : > { %v437_v29 = vadd.f32 %v436_v3, %v435_v59  ;;  %v444_v31 = vadd.f32 %v443_v7, %v442_v61  ;;  %v451_v33 = vadd.f32 %v450_v25, %v449_v63  ;;  %v457_v35 = vsel %vm199_vm0, %v933_v1, 0.0 }
 0x144   : > { %v466_v36 = vmul.f32 0.0625, %v401_v28  ;;  %v409_v38 = vrot.slane %v408_v30, 1  ;;  %v416_v40 = vrot.slane %v415_v32, 2  ;;  %v423_v42 = vrot.slane %v422_v34, 4 }
 0x145   : > { %v470_v37 = vmul.f32 0.0625, %v437_v29  ;;  %v445_v39 = vrot.slane %v444_v31, 1  ;;  %v452_v41 = vrot.slane %v451_v33, 2  ;;  %v456_v43 = vsel %vm199_vm0, %v384_v23, 0.0 }
 0x146   : > { %1005 = vtanh.f32 %v466_v36  ;;  %v410_v44 = vadd.f32 %v409_v38, %v408_v30  ;;  %v458_v46 = vadd.f32 %v457_v35, %v456_v43  ;;  %v417_v47 = vadd.f32 %v416_v40, %v415_v32 }
 0x147   : > { %v446_v45 = vadd.f32 %v445_v39, %v444_v31  ;;  %1007 = vtanh.f32 %v470_v37  ;;  %v453_v48 = vadd.f32 %v452_v41, %v451_v33  ;;  %v424_v49 = vadd.f32 %v423_v42, %v422_v34 }
 0x148   : > { %v467_v50 = vmul.f32 0.0625, %v410_v44  ;;  %v459_v51 = vrot.slane %v458_v46, 4  ;;  %v418_v52 = vrot.slane %v417_v47, 1 }
 0x149   : > { %v454_v53 = vrot.slane %v453_v48, 1  ;;  %v425_v54 = vrot.slane %v424_v49, 2  ;;  %v471_v55 = vmul.f32 0.0625, %v446_v45 }
 0x14a   : > { %1009 = vtanh.f32 %v467_v50  ;;  %v460_v56 = vadd.f32 %v459_v51, %v458_v46  ;;  %v419_v57 = vadd.f32 %v418_v52, %v417_v47 }
 0x14b   : > { %v426_v58 = vadd.f32 %v425_v54, %v424_v49  ;;  %v455_v60 = vadd.f32 %v454_v53, %v453_v48  ;;  %1011 = vtanh.f32 %v471_v55 }
 0x14c   : > { %v461_v59 = vrot.slane %v460_v56, 2  ;;  %v468_v61 = vmul.f32 0.0625, %v419_v57 }
 0x14d   : > { %v427_v62 = vrot.slane %v426_v58, 1  ;;  %v472_v2 = vmul.f32 0.0625, %v455_v60 }
 0x14e   : > { %v462_v63 = vadd.f32 %v461_v59, %v460_v56  ;;  %1013 = vtanh.f32 %v468_v61 }
 0x14f   : > { %v428_v4 = vadd.f32 %v427_v62, %v426_v58  ;;  %1015 = vtanh.f32 %v472_v2 }
 0x150   : > { %v1006_v0 = vpop.eup %1005  ;;  %v463_v7 = vrot.slane %v462_v63, 1 }
 0x151   : > { %v1008_v1 = vpop.eup %1007  ;;  %v482_v3 = vmul.f32 %v1006_v0, %v1395_v5  ;;  %v483_v24 = vmul.f32 %v1006_v0, %v1405_v8  ;;  %v469_v28 = vmul.f32 0.0625, %v428_v4 }
 0x152   : > { %v491_v22 = vmul.f32 %v1008_v1, %v1408_v9  ;;  %v464_v29 = vadd.f32 %v463_v7, %v462_v63  ;;  %v490_v32 = vmul.f32 %v1008_v1, %v1398_v6 }
 0x153   : > { %v498_v23 = vsel %vm199_vm0, %v482_v3, 0.0  ;;  %v501_v30 = vsel %vm199_vm0, %v483_v24, 0.0  ;;  %1017 = vtanh.f32 %v469_v28 }
 0x154   : > { %v1010_v25 = vpop.eup %1009  ;;  %v525_v26 = vsel %vm199_vm0, %v491_v22, 0.0  ;;  %499 = vadd.xlane.f32.xlu0 %v498_v23  ;;  %v473_v35 = vmul.f32 0.0625, %v464_v29  ;;  %v522_v36 = vsel %vm199_vm0, %v490_v32, 0.0 }
 0x155   : > { %526 = vadd.xlane.f32.xlu1 %v525_v26  ;;  %v484_v27 = vmul.f32 %v1010_v25, %v1411_v10  ;;  %v1012_v33 = vpop.eup %1011  ;;  %v485_v34 = vmul.f32 %v1010_v25, %v1423_v12 }
 0x156   : > { %v492_v37 = vmul.f32 %v1012_v33, %v1414_v11  ;;  %v493_v40 = vmul.f32 %v1012_v33, %v1428_v13  ;;  %1019 = vtanh.f32 %v473_v35 }
 0x157   : > { %v504_v31 = vsel %vm199_vm0, %v484_v27, 0.0  ;;  %v507_v39 = vsel %vm199_vm0, %v485_v34, 0.0 }
 0x158   : > { %502 = vadd.xlane.f32.xlu0 %v501_v30  ;;  %v1014_v38 = vpop.eup %1013  ;;  %v528_v41 = vsel %vm199_vm0, %v492_v37, 0.0  ;;  %v531_v44 = vsel %vm199_vm0, %v493_v40, 0.0 }
 0x159   : > { %505 = vadd.xlane.f32.xlu1 %v504_v31  ;;  %v486_v42 = vmul.f32 %v1014_v38, %v1431_v14  ;;  %v1016_v43 = vpop.eup %1015  ;;  %v487_v45 = vmul.f32 %v1014_v38, %v1443_v16 }
 0x15a   : > { %v494_v47 = vmul.f32 %v1016_v43, %v1434_v15  ;;  %v495_v50 = vmul.f32 %v1016_v43, %v1448_v17 }
 0x15b   : > { %v510_v46 = vsel %vm199_vm0, %v486_v42, 0.0  ;;  %v513_v49 = vsel %vm199_vm0, %v487_v45, 0.0 }
 0x15c   : > { %523 = vadd.xlane.f32.xlu0 %v522_v36  ;;  %v534_v51 = vsel %vm199_vm0, %v494_v47, 0.0  ;;  %v537_v54 = vsel %vm199_vm0, %v495_v50, 0.0 }
 0x15d   : > { %508 = vadd.xlane.f32.xlu1 %v507_v39  ;;  %v1018_v48 = vpop.eup %1017 }
 0x15e   : > { %v488_v52 = vmul.f32 %v1018_v48, %v1451_v18  ;;  %v489_v55 = vmul.f32 %v1018_v48, %v1463_v20 }
 0x160   : > { %529 = vadd.xlane.f32.xlu0 %v528_v41  ;;  %v1020_v53 = vpop.eup %1019  ;;  %v516_v56 = vsel %vm199_vm0, %v488_v52, 0.0  ;;  %v519_v58 = vsel %vm199_vm0, %v489_v55, 0.0 }
 0x161   : > { %532 = vadd.xlane.f32.xlu1 %v531_v44  ;;  %v496_v57 = vmul.f32 %v1020_v53, %v1454_v19  ;;  %v497_v59 = vmul.f32 %v1020_v53, %v1468_v21 }
 0x163   : > { %v540_v60 = vsel %vm199_vm0, %v496_v57, 0.0  ;;  %v543_v61 = vsel %vm199_vm0, %v497_v59, 0.0 }
 0x164   : > { %511 = vadd.xlane.f32.xlu0 %v510_v46 }
 0x165   : > { %514 = vadd.xlane.f32.xlu1 %v513_v49 }
 0x168   : > { %535 = vadd.xlane.f32.xlu0 %v534_v51 }
 0x169   : > { %538 = vadd.xlane.f32.xlu1 %v537_v54 }
 0x16c   : > { %517 = vadd.xlane.f32.xlu0 %v516_v56 }
 0x16d   : > { %520 = vadd.xlane.f32.xlu1 %v519_v58 }
 0x170   : > { %541 = vadd.xlane.f32.xlu0 %v540_v60 }
 0x171   : > { %544 = vadd.xlane.f32.xlu1 %v543_v61 }
 0x1e1   : > { %v500_v62 = vpop.xlane.xlu0 %499 }
 0x1e2   : > { %v527_v63 = vpop.xlane.xlu1 %526  ;;  %v546_v0 = vsub.f32 0.0, %v500_v62 }
 0x1e3   : > { %v555_v1 = vsub.f32 0.0, %v527_v63 }
 0x1e4   : > { %v562_v2 = vmul.f32 1.442695, %v546_v0 }
 0x1e5   : > { %v580_v3 = vmul.f32 1.442695, %v555_v1  ;;  %v503_v4 = vpop.xlane.xlu0 %502 }
 0x1e6   : > { %1021 = vpow2.f32 %v562_v2  ;;  %v547_v7 = vsub.f32 0.0, %v503_v4  ;;  %v506_v22 = vpop.xlane.xlu1 %505 }
 0x1e7   : > { %1023 = vpow2.f32 %v580_v3  ;;  %v548_v23 = vsub.f32 0.0, %v506_v22 }
 0x1e8   : > { %v564_v24 = vmul.f32 1.442695, %v547_v7 }
 0x1e9   : > { %v566_v25 = vmul.f32 1.442695, %v548_v23  ;;  %v524_v26 = vpop.xlane.xlu0 %523 }
 0x1ea   : > { %1025 = vpow2.f32 %v564_v24  ;;  %v554_v27 = vsub.f32 0.0, %v524_v26  ;;  %v509_v28 = vpop.xlane.xlu1 %508 }
 0x1eb   : > { %1027 = vpow2.f32 %v566_v25  ;;  %v549_v29 = vsub.f32 0.0, %v509_v28 }
 0x1ec   : > { %v578_v30 = vmul.f32 1.442695, %v554_v27 }
 0x1ed   : > { %v568_v31 = vmul.f32 1.442695, %v549_v29  ;;  %v530_v32 = vpop.xlane.xlu0 %529 }
 0x1ee   : > { %1029 = vpow2.f32 %v578_v30  ;;  %v556_v33 = vsub.f32 0.0, %v530_v32  ;;  %v533_v34 = vpop.xlane.xlu1 %532 }
 0x1ef   : > { %1031 = vpow2.f32 %v568_v31  ;;  %v557_v35 = vsub.f32 0.0, %v533_v34 }
 0x1f0   : > { %v1022_v36 = vpop.eup %1021  ;;  %v582_v37 = vmul.f32 1.442695, %v556_v33 }
 0x1f1   : > { %v1024_v38 = vpop.eup %1023  ;;  %v594_v39 = vadd.f32 1.0, %v1022_v36  ;;  %v584_v40 = vmul.f32 1.442695, %v557_v35  ;;  %v512_v41 = vpop.xlane.xlu0 %511 }
 0x1f2   : > { %v603_v42 = vadd.f32 1.0, %v1024_v38  ;;  %1033 = vpow2.f32 %v582_v37  ;;  %v515_v43 = vpop.xlane.xlu1 %514  ;;  %v550_v44 = vsub.f32 0.0, %v512_v41 }
 0x1f3   : > { %1035 = vrcp.f32 %v594_v39  ;;  %v551_v45 = vsub.f32 0.0, %v515_v43 }
 0x1f4   : > { %v1026_v46 = vpop.eup %1025  ;;  %1037 = vrcp.f32 %v603_v42  ;;  %v570_v47 = vmul.f32 1.442695, %v550_v44 }
 0x1f5   : > { %v1028_v48 = vpop.eup %1027  ;;  %v595_v49 = vadd.f32 1.0, %v1026_v46  ;;  %1039 = vpow2.f32 %v584_v40  ;;  %v572_v50 = vmul.f32 1.442695, %v551_v45  ;;  %v536_v51 = vpop.xlane.xlu0 %535 }
 0x1f6   : > { %v596_v52 = vadd.f32 1.0, %v1028_v48  ;;  %1041 = vpow2.f32 %v570_v47  ;;  %v539_v53 = vpop.xlane.xlu1 %538  ;;  %v558_v54 = vsub.f32 0.0, %v536_v51 }
 0x1f7   : > { %1043 = vrcp.f32 %v595_v49  ;;  %v559_v55 = vsub.f32 0.0, %v539_v53 }
 0x1f8   : > { %v1030_v56 = vpop.eup %1029  ;;  %1045 = vrcp.f32 %v596_v52  ;;  %v586_v57 = vmul.f32 1.442695, %v558_v54 }
 0x1f9   : > { %v1032_v58 = vpop.eup %1031  ;;  %v602_v59 = vadd.f32 1.0, %v1030_v56  ;;  %1047 = vpow2.f32 %v572_v50  ;;  %v588_v60 = vmul.f32 1.442695, %v559_v55  ;;  %v518_v61 = vpop.xlane.xlu0 %517 }
 0x1fa   : > { %v597_v62 = vadd.f32 1.0, %v1032_v58  ;;  %1049 = vpow2.f32 %v586_v57  ;;  %v521_v63 = vpop.xlane.xlu1 %520  ;;  %v552_v0 = vsub.f32 0.0, %v518_v61 }
 0x1fb   : > { %1051 = vrcp.f32 %v602_v59  ;;  %v553_v1 = vsub.f32 0.0, %v521_v63 }
 0x1fc   : > { %v1034_v2 = vpop.eup %1033  ;;  %1053 = vrcp.f32 %v597_v62  ;;  %v574_v3 = vmul.f32 1.442695, %v552_v0 }
 0x1fd   : > { %v1036_v4 = vpop.eup %1035  ;;  %v604_v7 = vadd.f32 1.0, %v1034_v2  ;;  %1055 = vpow2.f32 %v588_v60  ;;  %v576_v22 = vmul.f32 1.442695, %v553_v1  ;;  %v542_v23 = vpop.xlane.xlu0 %541 }
 0x1fe   : > { %v1038_v24 = vpop.eup %1037  ;;  %1057 = vpow2.f32 %v574_v3  ;;  %v545_v25 = vpop.xlane.xlu1 %544  ;;  %v560_v26 = vsub.f32 0.0, %v542_v23  ;;  %v642_v45 = vmul.f32 %v1036_v4, %v1395_v5 }
 0x1ff   : > { %v1040_v27 = vpop.eup %1039  ;;  %1059 = vrcp.f32 %v604_v7  ;;  %v561_v28 = vsub.f32 0.0, %v545_v25 }
 0x200   : > { %v1042_v29 = vpop.eup %1041  ;;  %v605_v30 = vadd.f32 1.0, %v1040_v27  ;;  %1061 = vpow2.f32 %v576_v22  ;;  %v590_v34 = vmul.f32 1.442695, %v560_v26 }
 0x201   : > { %v1044_v31 = vpop.eup %1043  ;;  %v598_v32 = vadd.f32 1.0, %v1042_v29  ;;  %v592_v33 = vmul.f32 1.442695, %v561_v28 }
 0x202   : > { %v1046_v35 = vpop.eup %1045  ;;  %1063 = vrcp.f32 %v605_v30  ;;  %v643_v40 = vmul.f32 %v1044_v31, %v1405_v8 }
 0x203   : > { %v1048_v36 = vpop.eup %1047  ;;  %1065 = vrcp.f32 %v598_v32  ;;  %v644_v43 = vmul.f32 %v1046_v35, %v1411_v10  ;;  %v651_v10 = vmul.f32 %v1038_v24, %v1408_v9 }
 0x204   : > { %v1050_v37 = vpop.eup %1049  ;;  %v599_v38 = vadd.f32 1.0, %v1048_v36  ;;  %1067 = vpow2.f32 %v592_v33  ;;  %v659_v51 = vsel %vm199_vm0, %v643_v40, 0.0 }
 0x205   : > { %v1052_v39 = vpop.eup %1051  ;;  %v606_v41 = vadd.f32 1.0, %v1050_v37  ;;  %1069 = vpow2.f32 %v590_v34  ;;  %v667_v54 = vsel %vm199_vm0, %v644_v43, 0.0  ;;  %v695_v9 = vsel %vm199_vm0, %v651_v10, 0.0 }
 0x206   : > { %v1054_v42 = vpop.eup %1053  ;;  %1071 = vrcp.f32 %v599_v38  ;;  %v650_v48 = vmul.f32 %v1052_v39, %v1398_v6 }
 0x207   : > { %v1056_v44 = vpop.eup %1055  ;;  %v645_v46 = vmul.f32 %v1054_v42, %v1423_v12  ;;  %1073 = vrcp.f32 %v606_v41  ;;  %v658_v12 = vsel %vm199_vm0, %v642_v45, 0.0 }
 0x208   : > { %v1058_v47 = vpop.eup %1057  ;;  %v607_v49 = vadd.f32 1.0, %v1056_v44  ;;  %v660_v57 = vadd.f32 %v659_v51, %v658_v12  ;;  %v694_v58 = vsel %vm199_vm0, %v650_v48, 0.0 }
 0x209   : > { %v1060_v50 = vpop.eup %1059  ;;  %v668_v8 = vsel %vm199_vm0, %v645_v46, 0.0  ;;  %v600_v52 = vadd.f32 1.0, %v1058_v47  ;;  %v696_v0 = vadd.f32 %v695_v9, %v694_v58 }
 0x20a   : > { %v1062_v53 = vpop.eup %1061  ;;  %v652_v5 = vmul.f32 %v1060_v50, %v1414_v11  ;;  %1075 = vrcp.f32 %v607_v49  ;;  %v669_v55 = vadd.f32 %v668_v8, %v667_v54  ;;  %v661_v7 = vrot.slane %v660_v57, 4 }
 0x20b   : > { %v601_v56 = vadd.f32 1.0, %v1062_v53  ;;  %1077 = vrcp.f32 %v600_v52 }
 0x20c   : > { %v1064_v6 = vpop.eup %1063  ;;  %v703_v62 = vsel %vm199_vm0, %v652_v5, 0.0  ;;  %v670_v1 = vrot.slane %v669_v55, 4  ;;  %v662_v32 = vadd.f32 %v661_v7, %v660_v57 }
 0x20d   : > { %v1066_v59 = vpop.eup %1065  ;;  %v653_v60 = vmul.f32 %v1064_v6, %v1428_v13  ;;  %1079 = vrcp.f32 %v601_v56 }
 0x20e   : > { %v1068_v61 = vpop.eup %1067  ;;  %v646_v11 = vmul.f32 %v1066_v59, %v1431_v14  ;;  %v697_v14 = vrot.slane %v696_v0, 4  ;;  %v671_v27 = vadd.f32 %v670_v1, %v669_v55  ;;  %v663_v44 = vrot.slane %v662_v32, 2 }
 0x20f   : > { %v1070_v63 = vpop.eup %1069  ;;  %v704_v2 = vsel %vm199_vm0, %v653_v60, 0.0  ;;  %v609_v3 = vadd.f32 1.0, %v1068_v61 }
 0x210   : > { %v1072_v4 = vpop.eup %1071  ;;  %v608_v22 = vadd.f32 1.0, %v1070_v63  ;;  %v705_v24 = vadd.f32 %v704_v2, %v703_v62  ;;  %v676_v25 = vsel %vm199_vm0, %v646_v11, 0.0  ;;  %v698_v38 = vadd.f32 %v697_v14, %v696_v0 }
 0x211   : > { %v1074_v23 = vpop.eup %1073  ;;  %v647_v13 = vmul.f32 %v1072_v4, %v1443_v16  ;;  %1081 = vrcp.f32 %v609_v3  ;;  %v664_v10 = vadd.f32 %v663_v44, %v662_v32 }
 0x212   : > { %v654_v26 = vmul.f32 %v1074_v23, %v1434_v15  ;;  %1083 = vrcp.f32 %v608_v22  ;;  %v706_v33 = vrot.slane %v705_v24, 4  ;;  %v672_v15 = vrot.slane %v671_v27, 2 }
 0x213   : > { %v677_v28 = vsel %vm199_vm0, %v647_v13, 0.0  ;;  %v699_v51 = vrot.slane %v698_v38, 2  ;;  %v665_v61 = vrot.slane %v664_v10, 1 }
 0x214   : > { %v1076_v29 = vpop.eup %1075  ;;  %v678_v30 = vadd.f32 %v677_v28, %v676_v25  ;;  %v712_v35 = vsel %vm199_vm0, %v654_v26, 0.0  ;;  %v707_v45 = vadd.f32 %v706_v33, %v705_v24  ;;  %v673_v49 = vadd.f32 %v672_v15, %v671_v27 }
 0x215   : > { %v1078_v31 = vpop.eup %1077  ;;  %v655_v34 = vmul.f32 %v1076_v29, %v1448_v17  ;;  %v700_v58 = vadd.f32 %v699_v51, %v698_v38  ;;  %v666_v3 = vadd.f32 %v665_v61, %v664_v10 }
 0x216   : > { %v679_v16 = vrot.slane %v678_v30, 4  ;;  %v648_v36 = vmul.f32 %v1078_v31, %v1451_v18  ;;  %v708_v5 = vrot.slane %v707_v45, 2  ;;  %v674_v56 = vrot.slane %v673_v49, 1 }
 0x217   : > { %v1080_v37 = vpop.eup %1079  ;;  %v713_v39 = vsel %vm199_vm0, %v655_v34, 0.0  ;;  %v701_v1 = vrot.slane %v700_v58, 1 }
 0x218   : > { %v680_v40 = vadd.f32 %v679_v16, %v678_v30  ;;  %v714_v41 = vadd.f32 %v713_v39, %v712_v35  ;;  %v649_v42 = vmul.f32 %v1080_v37, %v1463_v20  ;;  %v685_v43 = vsel %vm199_vm0, %v648_v36, 0.0 }
 0x219   : > { %v675_v63 = vadd.f32 %v674_v56, %v673_v49  ;;  %v702_v25 = vadd.f32 %v701_v1, %v700_v58 }
 0x21a   : > { %v681_v46 = vrot.slane %v680_v40, 2  ;;  %v715_v17 = vrot.slane %v714_v41, 4  ;;  %v686_v47 = vsel %vm199_vm0, %v649_v42, 0.0 }
 0x21b   : > { %v1082_v48 = vpop.eup %1081  ;;  %v687_v18 = vadd.f32 %v686_v47, %v685_v43  ;;  %v739_v13 = vsel %vm738_vm1, %v675_v63, %v666_v3 }
 0x21c   : > { %v1084_v50 = vpop.eup %1083  ;;  %v682_v8 = vadd.f32 %v681_v46, %v680_v40  ;;  %v657_v52 = vmul.f32 %v1082_v48, %v1468_v21  ;;  %v716_v53 = vadd.f32 %v715_v17, %v714_v41  ;;  %v709_v21 = vadd.f32 %v708_v5, %v707_v45 }
 0x21d   : > { %v688_v54 = vrot.slane %v687_v18, 4  ;;  %v656_v20 = vmul.f32 %v1084_v50, %v1454_v19 }
 0x21e   : > { %v722_v12 = vsel %vm199_vm0, %v657_v52, 0.0  ;;  %v717_v55 = vrot.slane %v716_v53, 2  ;;  %v683_v59 = vrot.slane %v682_v8, 1  ;;  %v710_v7 = vrot.slane %v709_v21, 1 }
 0x21f   : > { %v689_v6 = vadd.f32 %v688_v54, %v687_v18  ;;  %v721_v57 = vsel %vm199_vm0, %v656_v20, 0.0 }
 0x220   : > { %v723_v60 = vadd.f32 %v722_v12, %v721_v57  ;;  %v718_v11 = vadd.f32 %v717_v55, %v716_v53  ;;  %v684_v19 = vadd.f32 %v683_v59, %v682_v8  ;;  %v711_v27 = vadd.f32 %v710_v7, %v709_v21 }
 0x221   : > { %v690_v9 = vrot.slane %v689_v6, 2 }
 0x222   : > { %v724_v62 = vrot.slane %v723_v60, 4  ;;  %v719_v22 = vrot.slane %v718_v11, 1  ;;  %v741_v14 = vsel %vm740_vm2, %v684_v19, %v739_v13 }
 0x223   : > { %v691_v0 = vadd.f32 %v690_v9, %v689_v6 }
 0x224   : > { %v725_v2 = vadd.f32 %v724_v62, %v723_v60  ;;  %v720_v29 = vadd.f32 %v719_v22, %v718_v11 }
 0x225   : > { %v692_v4 = vrot.slane %v691_v0, 1 }
 0x226   : > { %v726_v23 = vrot.slane %v725_v2, 2 }
 0x227   : > { %v693_v24 = vadd.f32 %v692_v4, %v691_v0 }
 0x228   : > { %v727_v26 = vadd.f32 %v726_v23, %v725_v2 }
 0x229   : > { %v743_v28 = vsel %vm742_vm3, %v693_v24, %v741_v14 }
 0x22a   : > { %v728_v30 = vrot.slane %v727_v26, 1  ;;  %v745_v31 = vsel %vm744_vm4, %v702_v25, %v743_v28 }
 0x22b   : > { %v747_v32 = vsel %vm746_vm5, %v711_v27, %v745_v31 }
 0x22c   : > { %v729_v33 = vadd.f32 %v728_v30, %v727_v26  ;;  %v749_v34 = vsel %vm748_vm6, %v720_v29, %v747_v32 }
 0x22e   : > { %v751_v35 = vsel %vm750_vm7, %v729_v33, %v749_v34 }
 0x22f   : > { %753 = vst.msk [vmem:[%s177_s4] sm:$0xff] %vm199_vm0, %v751_v35 }
 0x230   : > { %1156 = shalt.err (!%p1153_p7)
}
 0x231   : > { %s1157_s18 = scalar_lea.hbm %s1559_s23, 128  ;;  %s1161_s26 = scalar_lea.hbm %s1606_s2, 256 }
 0x232   : > { %p1158_p9 = scmp.ne.s32.totalorder %s1559_s23, %s1157_s18  ;;  %p1162_p5 = scmp.lt.u32.totalorder %s1559_s23, %s1606_s2 }
 0x233   : > { %p1163_p11 = scmp.lt.u32.totalorder %s1161_s26, %s1157_s18  ;;  %p1165_p4 = scmp.lt.u32.totalorder %s1157_s18, %s1559_s23 }
 0x234   : > { %p1159_p1 = pnand %p1158_p9, %p1329_p12 }
 0x235   : > { %p1164_p2 = por %p1163_p11, %p1162_p5 }
 0x236   : > { %p1160_p0 = pneg %p1159_p1 }
 0x237   : > { %p1166_p6 = por %p1165_p4, %p1164_p2 }
 0x239   : > { %p1167_p8 = pnand %p1166_p6, %p1160_p0 }
 0x23b   : > { %1170 = shalt.err (!%p1167_p8)
}
 0x23c   : > { %952 = dma.vmem_to_hbm [thread:$0]  (%p1329_p12), %s1561_s5, 128, %s1559_s23, %s755_s13  }
 0x23d PF: > { %s780_s30 = sand.u32 1, %s1201_s9   ;;  %p1621_p10 = scmp.ne.s32.totalorder %s1611_s16, 0 }
 0x23e   : > { %p1622_p13 = scmp.ge.s32.totalorder %s1213_s12, 2  ;;  %s781_s3 = scalar_lea.sflag [#allocation4], %s780_s30 }
 0x240   : > { %p963_p3 = pnand %p1622_p13, %p1621_p10 }
 0x242   : > { %1196 = dma.done.wait (!%p963_p3), %s781_s3, 128  }
 0x243   : > { %1198 = vsyncadd (!%p963_p3), %s781_s3, 4294967168  ;;  %p16_p7 = scmp.ge.s32.totalorder %s1291_s21, 4   ;;  %s1623_s9 = smov %s1205_s10 }
 0x244   : > { %s1624_s10 = smov %s1209_s11  ;;  %s1625_s11 = smov %s1325_s8 }
 0x245   : > { %s1626_s12 = smov %s1291_s21  ;;  %18 = sbr.rel (!%p16_p7) target bundleno = 6 (0x6), region = 77 }
 0x24c   :  { %786 = vsyncpa [#allocation3], 1 }
 0x24d   :  { %788 = vsyncpa [#allocation3 + $0x1], 1 }
 0x24e   :  { %789 = vsyncpa [#allocation6], 1 }
 0x24f   :  { %790 = vsyncpa [#allocation4], 1 }
 0x250   :  { %792 = vsyncpa [#allocation4 + $0x1], 1 }

</bundles_post_ra>
